<compile_context>
chip_gen: v7x
topology: tpu7x:2x2x1
jax: 0.10.0
libtpu: 0.0.40
codegen_flags: <defaults>
</compile_context>

<pallas_src>
import functools
import math

import jax
import jax.numpy as jnp
from jax.experimental import pallas as pl
from jax.experimental.pallas import tpu as pltpu


def _mha_kernel(x_ref, y_ref, wq_ref, bq_ref, wk_ref, bk_ref, wv_ref, bv_ref,
                o_ref, *, num_heads, head_dim, causal_mask, mxu_dtype, out_pad):
    # x_ref: (Bb, Sx, x_dim)   y_ref: (Bb, Sy, y_dim)
    # wq_ref: (x_dim, H*hd)    wk_ref/wv_ref: (y_dim, H*hd)   biases: (1, H*hd)
    # o_ref: (Bb, Sx, H*hd + out_pad)
    Bb, Sx, x_dim = x_ref.shape
    _, Sy, y_dim = y_ref.shape
    H, hd = num_heads, head_dim
    HD = H * hd
    BH = Bb * H

    # Fold (Bb, Sx) onto the sublane axis: one lane-dense MXU matmul per
    # projection, shared (possibly bf16) weights resident in VMEM.
    x2 = x_ref[...].reshape(Bb * Sx, x_dim).astype(mxu_dtype)
    y2 = y_ref[...].reshape(Bb * Sy, y_dim).astype(mxu_dtype)

    # 1/sqrt(hd) is already folded into wq_ref / bq_ref at pack time.
    q = jnp.dot(x2, wq_ref[...], preferred_element_type=jnp.float32) + bq_ref[...]
    k = jnp.dot(y2, wk_ref[...], preferred_element_type=jnp.float32) + bk_ref[...]
    v = jnp.dot(y2, wv_ref[...], preferred_element_type=jnp.float32) + bv_ref[...]

    # One relayout per tensor to a single leading (Bb*H) batch dim
    # (rank-3 batched einsum is the documented, supported in-kernel pattern).
    def to_batched(t, S):  # (Bb*S, HD) -> (Bb*H, S, hd)
        return jnp.transpose(t.reshape(Bb, S, H, hd), (0, 2, 1, 3)).reshape(BH, S, hd)

    qh = to_batched(q, Sx).astype(mxu_dtype)
    kh = to_batched(k, Sy).astype(mxu_dtype)
    vh = to_batched(v, Sy).astype(mxu_dtype)

    # Batched scores for all (batch, head) pairs at once.
    s = jnp.einsum("bqd,bkd->bqk", qh, kh,
                   preferred_element_type=jnp.float32)        # (BH, Sx, Sy)

    if causal_mask:
        row = jax.lax.broadcasted_iota(jnp.int32, (Sx, Sy), 0)
        col = jax.lax.broadcasted_iota(jnp.int32, (Sx, Sy), 1)
        # Finite large-negative sentinel (avoids -inf - (-inf) NaN hazards).
        s = s + jnp.where(col > row, jnp.float32(-1e30), jnp.float32(0.0))

    # Numerically stable softmax, strictly f32, exact divide.
    m = jnp.max(s, axis=-1, keepdims=True)
    e = jnp.exp(s - m)
    p = e / jnp.sum(e, axis=-1, keepdims=True)

    # Batched PV, then one relayout back to heads-concatenated lane order.
    o = jnp.einsum("bqk,bkd->bqd", p.astype(mxu_dtype), vh,
                   preferred_element_type=jnp.float32)        # (BH, Sx, hd)
    o = jnp.transpose(o.reshape(Bb, H, Sx, hd), (0, 2, 1, 3)).reshape(Bb, Sx, HD)
    o = o.astype(o_ref.dtype)
    if out_pad:
        # Lane-dense (multiple-of-128) store; the pad is sliced off in the wrapper.
        o = jnp.concatenate([o, jnp.zeros((Bb, Sx, out_pad), o_ref.dtype)], axis=-1)
    o_ref[...] = o


def pack_mha_params(params, *, num_heads, head_dim, mxu_dtype=jnp.bfloat16):
    """Hoisted (once-per-model) packing of per-head weights.

    params: wq (H, x_dim, hd), bq (H, hd), wk/bk, wv/bv analogously.
    Packs to (in_dim, H*hd) with heads outermost on the lane dim (matching
    torch.cat head order), folds 1/sqrt(hd) into Wq/bq, casts MXU weight
    operands to `mxu_dtype` (biases stay f32 — added after f32 accumulation).
    """
    H, hd = num_heads, head_dim
    HD = H * hd
    scale = 1.0 / math.sqrt(float(hd))

    def pack_w(w):  # (H, in, hd) -> (in, H*hd)
        return jnp.transpose(w, (1, 0, 2)).reshape(w.shape[1], HD)

    return {
        "wq": (pack_w(params["wq"]) * scale).astype(mxu_dtype),
        "bq": (params["bq"].reshape(1, HD) * scale).astype(jnp.float32),
        "wk": pack_w(params["wk"]).astype(mxu_dtype),
        "bk": params["bk"].reshape(1, HD).astype(jnp.float32),
        "wv": pack_w(params["wv"]).astype(mxu_dtype),
        "bv": params["bv"].reshape(1, HD).astype(jnp.float32),
    }


def multi_head_attention(x, y, packed, *, num_heads, head_dim, mask=False,
                         batch_block=1):
    """Fused multi-head attention.

    batch_block=1  -> grid=(B,), batch-parallel (good on v7x's 2 TCs).
    batch_block=B  -> single grid step, whole batch folded onto sublanes
                      (good on single-TC v5e/v6e: no per-step overhead).
    """
    B, Sx, x_dim = x.shape
    _, Sy, y_dim = y.shape
    HD = num_heads * head_dim
    assert B % batch_block == 0

    # Lane-dense output slab: pad last dim up to a multiple of 128 so stores
    # are unmasked vst; slice the pad off below.
    out_pad = (-HD) % 128
    HD_pad = HD + out_pad
    mxu_dtype = packed["wq"].dtype

    kernel = functools.partial(
        _mha_kernel, num_heads=num_heads, head_dim=head_dim, causal_mask=mask,
        mxu_dtype=mxu_dtype, out_pad=out_pad)

    out = pl.pallas_call(
        kernel,
        out_shape=jax.ShapeDtypeStruct((B, Sx, HD_pad), jnp.float32),
        grid_spec=pltpu.PrefetchScalarGridSpec(
            num_scalar_prefetch=0,
            grid=(B // batch_block,),
            in_specs=[
                pl.BlockSpec((batch_block, Sx, x_dim), lambda b: (b, 0, 0)),  # x
                pl.BlockSpec((batch_block, Sy, y_dim), lambda b: (b, 0, 0)),  # y
                pl.BlockSpec((x_dim, HD), lambda b: (0, 0)),                  # Wq
                pl.BlockSpec((1, HD), lambda b: (0, 0)),                      # bq
                pl.BlockSpec((y_dim, HD), lambda b: (0, 0)),                  # Wk
                pl.BlockSpec((1, HD), lambda b: (0, 0)),                      # bk
                pl.BlockSpec((y_dim, HD), lambda b: (0, 0)),                  # Wv
                pl.BlockSpec((1, HD), lambda b: (0, 0)),                      # bv
            ],
            out_specs=pl.BlockSpec((batch_block, Sx, HD_pad),
                                   lambda b: (b, 0, 0)),
        ),
        compiler_params=pltpu.CompilerParams(
            dimension_semantics=("parallel",)),
    )(x, y, packed["wq"], packed["bq"], packed["wk"], packed["bk"],
      packed["wv"], packed["bv"])

    return out[..., :HD] if out_pad else out


def _reference(x, y, params, *, num_heads, head_dim, mask=False):
    hi = jax.lax.Precision.HIGHEST
    outs = []
    for h in range(num_heads):
        q = jnp.dot(x, params["wq"][h], precision=hi) + params["bq"][h]
        k = jnp.dot(y, params["wk"][h], precision=hi) + params["bk"][h]
        v = jnp.dot(y, params["wv"][h], precision=hi) + params["bv"][h]
        s = jnp.einsum("bqd,bkd->bqk", q, k, precision=hi) / jnp.sqrt(
            jnp.float32(head_dim))
        if mask:
            sx, sy = s.shape[-2:]
            tri = jnp.triu(jnp.ones((sx, sy), jnp.float32), k=1).astype(bool)
            s = jnp.where(tri[None], -jnp.inf, s)
        p = jax.nn.softmax(s, axis=-1)
        outs.append(jnp.einsum("bqk,bkd->bqd", p, v, precision=hi))
    return jnp.concatenate(outs, axis=-1)


if __name__ == "__main__":
    # Small, module-consistent shapes.
    B, Sx, Sy = 2, 8, 8
    x_dim, y_dim = 16, 24
    output_dim, num_heads = 32, 4
    head_dim = output_dim // num_heads

    key = jax.random.PRNGKey(0)
    ks = jax.random.split(key, 8)
    x = jax.random.normal(ks[0], (B, Sx, x_dim), dtype=jnp.float32)
    y = jax.random.normal(ks[1], (B, Sy, y_dim), dtype=jnp.float32)

    # nn.Linear(in, out): y = x @ W.T + b; stored here pre-transposed (in, out).
    def init(k, shape, fan_in):
        bound = 1.0 / math.sqrt(fan_in)
        return jax.random.uniform(k, shape, jnp.float32, -bound, bound)

    params = {
        "wq": init(ks[2], (num_heads, x_dim, head_dim), x_dim),
        "bq": init(ks[3], (num_heads, head_dim), x_dim),
        "wk": init(ks[4], (num_heads, y_dim, head_dim), y_dim),
        "bk": init(ks[5], (num_heads, head_dim), y_dim),
        "wv": init(ks[6], (num_heads, y_dim, head_dim), y_dim),
        "bv": init(ks[7], (num_heads, head_dim), y_dim),
    }

    # Packing hoisted out of the forward path: done once per "model".
    packed_f32 = pack_mha_params(params, num_heads=num_heads,
                                 head_dim=head_dim, mxu_dtype=jnp.float32)
    packed_bf16 = pack_mha_params(params, num_heads=num_heads,
                                  head_dim=head_dim, mxu_dtype=jnp.bfloat16)

    ref = _reference(x, y, params, num_heads=num_heads, head_dim=head_dim,
                     mask=False)
    ref_m = _reference(x, y, params, num_heads=num_heads, head_dim=head_dim,
                       mask=True)

    # f32 MXU path, batch-parallel grid (v7x-style knob).
    out = jax.block_until_ready(
        multi_head_attention(x, y, packed_f32, num_heads=num_heads,
                             head_dim=head_dim, mask=False, batch_block=1))
    assert out.shape == (B, Sx, output_dim), out.shape
    assert jnp.allclose(out, ref, atol=5e-3, rtol=5e-3), "f32 no-mask mismatch"

    out_m = jax.block_until_ready(
        multi_head_attention(x, y, packed_f32, num_heads=num_heads,
                             head_dim=head_dim, mask=True, batch_block=1))
    assert jnp.allclose(out_m, ref_m, atol=5e-3, rtol=5e-3), "f32 mask mismatch"

    # bf16 MXU operands (v6e/v7x recommendation) + whole batch in one grid
    # step (v5e/v6e single-TC knob).
    out_bf = jax.block_until_ready(
        multi_head_attention(x, y, packed_bf16, num_heads=num_heads,
                             head_dim=head_dim, mask=False, batch_block=B))
    assert out_bf.shape == (B, Sx, output_dim), out_bf.shape
    assert jnp.allclose(out_bf, ref, atol=5e-2, rtol=5e-2), "bf16 no-mask mismatch"

    out_bf_m = jax.block_until_ready(
        multi_head_attention(x, y, packed_bf16, num_heads=num_heads,
                             head_dim=head_dim, mask=True, batch_block=B))
    assert jnp.allclose(out_bf_m, ref_m, atol=5e-2, rtol=5e-2), "bf16 mask mismatch"

    print("KERNEL_OK")
</pallas_src>

<mosaic_0001>
module attributes {stable_mosaic.version = 11 : i64} {
  func.func @_mha_kernel(%arg0: i32, %arg1: memref<1x8x16xf32, #tpu.memory_space<vmem>>, %arg2: memref<1x8x24xf32, #tpu.memory_space<vmem>>, %arg3: memref<16x32xf32, #tpu.memory_space<vmem>>, %arg4: memref<1x32xf32, #tpu.memory_space<vmem>>, %arg5: memref<24x32xf32, #tpu.memory_space<vmem>>, %arg6: memref<1x32xf32, #tpu.memory_space<vmem>>, %arg7: memref<24x32xf32, #tpu.memory_space<vmem>>, %arg8: memref<1x32xf32, #tpu.memory_space<vmem>>, %arg9: memref<1x8x128xf32, #tpu.memory_space<vmem>>) attributes {dimension_semantics = [#tpu.dimension_semantics<parallel>], iteration_bounds = array<i64: 2>, scalar_prefetch = 0 : i64, scratch_operands = 0 : i64, tpu.core_type = #tpu.core_type<tc>, window_params = [{transform_indices = @transform_0, window_bounds = array<i64: 1, 8, 16>}, {transform_indices = @transform_1, window_bounds = array<i64: 1, 8, 24>}, {pipeline_mode = #tpu.pipeline_mode<synchronous>, transform_indices = @transform_2, window_bounds = array<i64: 16, 32>}, {pipeline_mode = #tpu.pipeline_mode<synchronous>, transform_indices = @transform_3, window_bounds = array<i64: 1, 32>}, {pipeline_mode = #tpu.pipeline_mode<synchronous>, transform_indices = @transform_4, window_bounds = array<i64: 24, 32>}, {pipeline_mode = #tpu.pipeline_mode<synchronous>, transform_indices = @transform_5, window_bounds = array<i64: 1, 32>}, {pipeline_mode = #tpu.pipeline_mode<synchronous>, transform_indices = @transform_6, window_bounds = array<i64: 24, 32>}, {pipeline_mode = #tpu.pipeline_mode<synchronous>, transform_indices = @transform_7, window_bounds = array<i64: 1, 32>}, {transform_indices = @transform_8, window_bounds = array<i64: 1, 8, 128>}]} {
    %c0 = arith.constant 0 : index
    %c0_0 = arith.constant 0 : index
    %c0_1 = arith.constant 0 : index
    %0 = vector.load %arg1[%c0, %c0_0, %c0_1] : memref<1x8x16xf32, #tpu.memory_space<vmem>>, vector<1x8x16xf32>
    %1 = vector.shape_cast %0 : vector<1x8x16xf32> to vector<8x16xf32>
    %c0_2 = arith.constant 0 : index
    %c0_3 = arith.constant 0 : index
    %c0_4 = arith.constant 0 : index
    %2 = vector.load %arg2[%c0_2, %c0_3, %c0_4] : memref<1x8x24xf32, #tpu.memory_space<vmem>>, vector<1x8x24xf32>
    %3 = vector.shape_cast %2 : vector<1x8x24xf32> to vector<8x24xf32>
    %c0_5 = arith.constant 0 : index
    %c0_6 = arith.constant 0 : index
    %4 = vector.load %arg3[%c0_5, %c0_6] : memref<16x32xf32, #tpu.memory_space<vmem>>, vector<16x32xf32>
    %cst = arith.constant dense<0.000000e+00> : vector<8x32xf32>
    %5 = tpu.matmul %1, %4, %cst {dimension_numbers = #tpu.dot_dimension_numbers<[1], [0], [0], [1], [0, 0, 1, 1], [], []>} : vector<8x16xf32>, vector<16x32xf32>, vector<8x32xf32> -> vector<8x32xf32>
    %c0_7 = arith.constant 0 : index
    %c0_8 = arith.constant 0 : index
    %6 = vector.load %arg4[%c0_7, %c0_8] : memref<1x32xf32, #tpu.memory_space<vmem>>, vector<1x32xf32>
    %7 = vector.broadcast %6 : vector<1x32xf32> to vector<8x32xf32>
    %8 = arith.addf %5, %7 : vector<8x32xf32>
    %c0_9 = arith.constant 0 : index
    %c0_10 = arith.constant 0 : index
    %9 = vector.load %arg5[%c0_9, %c0_10] : memref<24x32xf32, #tpu.memory_space<vmem>>, vector<24x32xf32>
    %cst_11 = arith.constant dense<0.000000e+00> : vector<8x32xf32>
    %10 = tpu.matmul %3, %9, %cst_11 {dimension_numbers = #tpu.dot_dimension_numbers<[1], [0], [0], [1], [0, 0, 1, 1], [], []>} : vector<8x24xf32>, vector<24x32xf32>, vector<8x32xf32> -> vector<8x32xf32>
    %c0_12 = arith.constant 0 : index
    %c0_13 = arith.constant 0 : index
    %11 = vector.load %arg6[%c0_12, %c0_13] : memref<1x32xf32, #tpu.memory_space<vmem>>, vector<1x32xf32>
    %12 = vector.broadcast %11 : vector<1x32xf32> to vector<8x32xf32>
    %13 = arith.addf %10, %12 : vector<8x32xf32>
    %c0_14 = arith.constant 0 : index
    %c0_15 = arith.constant 0 : index
    %14 = vector.load %arg7[%c0_14, %c0_15] : memref<24x32xf32, #tpu.memory_space<vmem>>, vector<24x32xf32>
    %cst_16 = arith.constant dense<0.000000e+00> : vector<8x32xf32>
    %15 = tpu.matmul %3, %14, %cst_16 {dimension_numbers = #tpu.dot_dimension_numbers<[1], [0], [0], [1], [0, 0, 1, 1], [], []>} : vector<8x24xf32>, vector<24x32xf32>, vector<8x32xf32> -> vector<8x32xf32>
    %c0_17 = arith.constant 0 : index
    %c0_18 = arith.constant 0 : index
    %16 = vector.load %arg8[%c0_17, %c0_18] : memref<1x32xf32, #tpu.memory_space<vmem>>, vector<1x32xf32>
    %17 = vector.broadcast %16 : vector<1x32xf32> to vector<8x32xf32>
    %18 = arith.addf %15, %17 : vector<8x32xf32>
    %19 = vector.shape_cast %8 : vector<8x32xf32> to vector<1x8x4x8xf32>
    %20 = tpu.transpose %19, [0, 2, 1, 3] : vector<1x8x4x8xf32> -> vector<1x4x8x8xf32>
    %21 = vector.shape_cast %20 : vector<1x4x8x8xf32> to vector<4x8x8xf32>
    %22 = vector.shape_cast %13 : vector<8x32xf32> to vector<1x8x4x8xf32>
    %23 = tpu.transpose %22, [0, 2, 1, 3] : vector<1x8x4x8xf32> -> vector<1x4x8x8xf32>
    %24 = vector.shape_cast %23 : vector<1x4x8x8xf32> to vector<4x8x8xf32>
    %25 = vector.shape_cast %18 : vector<8x32xf32> to vector<1x8x4x8xf32>
    %26 = tpu.transpose %25, [0, 2, 1, 3] : vector<1x8x4x8xf32> -> vector<1x4x8x8xf32>
    %27 = vector.shape_cast %26 : vector<1x4x8x8xf32> to vector<4x8x8xf32>
    "tpu.trace_start"() <{level = 10 : i32, message = "bqd,bkd->bqk"}> : () -> ()
    %cst_19 = arith.constant dense<0.000000e+00> : vector<4x8x8xf32>
    %28 = tpu.matmul %21, %24, %cst_19 {dimension_numbers = #tpu.dot_dimension_numbers<[2], [2], [1], [1], [0, 0, 0, 1, 1, 1], [0], [0]>} : vector<4x8x8xf32>, vector<4x8x8xf32>, vector<4x8x8xf32> -> vector<4x8x8xf32>
    "tpu.trace_stop"() : () -> ()
    %cst_20 = arith.constant dense<0xFF800000> : vector<4x8xf32>
    %29 = vector.multi_reduction <maximumf>, %28, %cst_20 [2] : vector<4x8x8xf32> to vector<4x8xf32>
    %30 = vector.shape_cast %29 : vector<4x8xf32> to vector<4x8x1xf32>
    %31 = vector.broadcast %30 : vector<4x8x1xf32> to vector<4x8x8xf32>
    %32 = arith.subf %28, %31 : vector<4x8x8xf32>
    %33 = math.exp %32 : vector<4x8x8xf32>
    %cst_21 = arith.constant dense<0.000000e+00> : vector<4x8xf32>
    %34 = vector.multi_reduction <add>, %33, %cst_21 [2] : vector<4x8x8xf32> to vector<4x8xf32>
    %35 = vector.shape_cast %34 : vector<4x8xf32> to vector<4x8x1xf32>
    %36 = vector.broadcast %35 : vector<4x8x1xf32> to vector<4x8x8xf32>
    %37 = arith.divf %33, %36 : vector<4x8x8xf32>
    "tpu.trace_start"() <{level = 10 : i32, message = "bqk,bkd->bqd"}> : () -> ()
    %cst_22 = arith.constant dense<0.000000e+00> : vector<4x8x8xf32>
    %38 = tpu.matmul %37, %27, %cst_22 {dimension_numbers = #tpu.dot_dimension_numbers<[2], [1], [1], [2], [0, 0, 0, 1, 1, 2], [0], [0]>} : vector<4x8x8xf32>, vector<4x8x8xf32>, vector<4x8x8xf32> -> vector<4x8x8xf32>
    "tpu.trace_stop"() : () -> ()
    %39 = vector.shape_cast %38 : vector<4x8x8xf32> to vector<1x4x8x8xf32>
    %40 = tpu.transpose %39, [0, 2, 1, 3] : vector<1x4x8x8xf32> -> vector<1x8x4x8xf32>
    %41 = vector.shape_cast %40 : vector<1x8x4x8xf32> to vector<1x8x32xf32>
    %cst_23 = arith.constant 0.000000e+00 : f32
    %42 = vector.broadcast %cst_23 : f32 to vector<1x8x96xf32>
    %43 = tpu.concatenate %41, %42 in 2 : vector<1x8x32xf32>, vector<1x8x96xf32> -> vector<1x8x128xf32>
    %c0_24 = arith.constant 0 : index
    %c0_25 = arith.constant 0 : index
    %c0_26 = arith.constant 0 : index
    %44 = vector.load %arg9[%c0_24, %c0_25, %c0_26] : memref<1x8x128xf32, #tpu.memory_space<vmem>>, vector<1x8x128xf32>
    tpu.vector_store %arg9[%c0_24, %c0_25, %c0_26], %43 {strides = array<i32>} : memref<1x8x128xf32, #tpu.memory_space<vmem>>, vector<1x8x128xf32>,
    return
  }
  func.func @transform_0(%arg0: i32) -> (i32, i32, i32) {
    %c0_i32 = arith.constant 0 : i32
    %c0_i32_0 = arith.constant 0 : i32
    %c0_i32_1 = arith.constant 0 : i32
    return %arg0, %c0_i32, %c0_i32_0 : i32, i32, i32
  }
  func.func @transform_1(%arg0: i32) -> (i32, i32, i32) {
    %c0_i32 = arith.constant 0 : i32
    %c0_i32_0 = arith.constant 0 : i32
    %c0_i32_1 = arith.constant 0 : i32
    return %arg0, %c0_i32, %c0_i32_0 : i32, i32, i32
  }
  func.func @transform_2(%arg0: i32) -> (i32, i32) {
    %c0_i32 = arith.constant 0 : i32
    %c0_i32_0 = arith.constant 0 : i32
    %c0_i32_1 = arith.constant 0 : i32
    return %c0_i32, %c0_i32_0 : i32, i32
  }
  func.func @transform_3(%arg0: i32) -> (i32, i32) {
    %c0_i32 = arith.constant 0 : i32
    %c0_i32_0 = arith.constant 0 : i32
    %c0_i32_1 = arith.constant 0 : i32
    return %c0_i32, %c0_i32_0 : i32, i32
  }
  func.func @transform_4(%arg0: i32) -> (i32, i32) {
    %c0_i32 = arith.constant 0 : i32
    %c0_i32_0 = arith.constant 0 : i32
    %c0_i32_1 = arith.constant 0 : i32
    return %c0_i32, %c0_i32_0 : i32, i32
  }
  func.func @transform_5(%arg0: i32) -> (i32, i32) {
    %c0_i32 = arith.constant 0 : i32
    %c0_i32_0 = arith.constant 0 : i32
    %c0_i32_1 = arith.constant 0 : i32
    return %c0_i32, %c0_i32_0 : i32, i32
  }
  func.func @transform_6(%arg0: i32) -> (i32, i32) {
    %c0_i32 = arith.constant 0 : i32
    %c0_i32_0 = arith.constant 0 : i32
    %c0_i32_1 = arith.constant 0 : i32
    return %c0_i32, %c0_i32_0 : i32, i32
  }
  func.func @transform_7(%arg0: i32) -> (i32, i32) {
    %c0_i32 = arith.constant 0 : i32
    %c0_i32_0 = arith.constant 0 : i32
    %c0_i32_1 = arith.constant 0 : i32
    return %c0_i32, %c0_i32_0 : i32, i32
  }
  func.func @transform_8(%arg0: i32) -> (i32, i32, i32) {
    %c0_i32 = arith.constant 0 : i32
    %c0_i32_0 = arith.constant 0 : i32
    %c0_i32_1 = arith.constant 0 : i32
    return %arg0, %c0_i32, %c0_i32_0 : i32, i32, i32
  }
}

</mosaic_0001>

<bundles_post_ra>
// kernel: tpu_custom_call.1
= control target key start
LH: loop header
LB: loop body
LE: loop exit
PB: predicated region body
PF: predicated region fallthrough
CT: control target
= control target key end

     0   :  { %s3034_s0 = inlined_call_operand.hbm [shape: f32[2,8,16], index: 0, kind: input, shape index: {}]   ;;  %s3035_s1 = inlined_call_operand.hbm [shape: f32[2,8,24], index: 1, kind: input, shape index: {}]   ;;  %s3036_s2 = inlined_call_operand.hbm [shape: f32[16,32], index: 2, kind: input, shape index: {}]   ;;  %s3037_s3 = inlined_call_operand.vmem [shape: f32[1,32], index: 3, kind: input, shape index: {}]   ;;  %s3038_s4 = inlined_call_operand.hbm [shape: f32[24,32], index: 4, kind: input, shape index: {}]   ;;  %s3039_s5 = inlined_call_operand.vmem [shape: f32[1,32], index: 5, kind: input, shape index: {}]   ;;  %s3040_s6 = inlined_call_operand.hbm [shape: f32[24,32], index: 6, kind: input, shape index: {}]   ;;  %s3041_s7 = inlined_call_operand.vmem [shape: f32[1,32], index: 7, kind: input, shape index: {}]   ;;  %s3042_s8 = inlined_call_operand.hbm [shape: f32[2,8,128], index: 8, kind: output, shape index: {}]  }
   0x1   :  { %3049 = sst [smem:[#allocation19_spill]] %s3036_s2 }
   0x2   :  { %3050 = sst [smem:[#allocation20_spill]] %s3038_s4 }
   0x3   :  { %3051 = sst [smem:[#allocation21_spill]] %s3040_s6 }
   0x4   :  { %13 = vsyncpa [#allocation3], 0 }
   0x5   :  { %15 = vsyncpa [#allocation3 + $0x1], 0 }
   0x6   :  { %16 = vsyncpa [#allocation6], 0 }
   0x7   :  { %18 = vsyncpa [#allocation6 + $0x1], 0 }
   0x8   :  { %19 = vsyncpa [#allocation9], 0 }
   0x9   :  { %20 = vsyncpa [#allocation4], 0 }
   0xa   :  { %22 = vsyncpa [#allocation4 + $0x1], 0  ;;  %s2565_s27 = smov 0   ;;  %s2567_s28 = smov 0  }
   0xb   :  { %s2569_s29 = smov 0   ;;  %s2571_s30 = smov 0  }
   0xc LB: > { %3052 = sst [smem:[#allocation17_spill]] %s2487_s27  ;;  %s2586_s9 = sadd.s32 4294967295, %s2499_s30   ;;  %s2499_s30 = sphi %s2571_s30, %s3079_s30   ;;  %s2495_s29 = sphi %s2569_s29, %s3078_s29   ;;  %s2491_s28 = sphi %s2567_s28, %s3077_s28   ;;  %s2487_s27 = sphi %s2565_s27, %s3076_s27  }
   0xd   : > { %s2018_s10 = sadd.s32 4294967294, %s2499_s30   ;;  %p48_p0 = scmp.ne.s32.totalorder %s2491_s28, %s2487_s27 }
   0xe   : > { %p3043_p1 = scmp.eq.s32.totalorder %s2586_s9, 0  ;;  %p230_p3 = scmp.eq.s32.totalorder %s2018_s10, 1 }
   0xf   : > { %p2019_p5 = scmp.ge.s32.totalorder %s2499_s30, 1  ;;  %p237_p7 = scmp.lt.s32.totalorder %s2499_s30, 3 }
  0x10   : > { %p2595_p4 = por %p3043_p1, %p48_p0  ;;  %p2600_p6 = por %p230_p3, %p48_p0 }
  0x11   : > { %p2605_p8 = pnand %p2019_p5, %p237_p7  ;;  %s2501_s14 = smov [#allocation7]  }
  0x12   : > { %s3053_s11 = scalar_select %p2595_p4, 1, 0 }
  0x13   : > { %s3054_s12 = scalar_select %p2600_p6, 1, 0 }
  0x14   : > { %s3056_s13 = scalar_select %p2605_p8, 1, 0 }
  0x15   : > { %3055 = sst [smem:[#allocation18_spill]] %s3054_s12  ;;  %s249_s15 = sshll.u32 %s2501_s14, 4  ;;  %s2609_s15 = int_to_ptr.vmem [resolvable:$true] %s249_s15 }
  0x16   : > { %p2184_p9 = pneg %p2605_p8  ;;  %s2502_s17 = smov [#allocation8]  }
  0x17   : > { %s265_s18 = sshll.u32 %s2502_s17, 4  ;;  %s2503_s19 = smov [#allocation10]   ;;  %s2620_s18 = int_to_ptr.vmem [resolvable:$true] %s265_s18 }
  0x18   : > { %p2616_p11 = pnand %p2184_p9, %p3043_p1  ;;  %s2622_s20 = sshll.u32 %s2503_s19, 4  ;;  %s282_s20 = int_to_ptr.vmem [resolvable:$true] %s2622_s20 }
  0x19   : > { %s3058_s2 = sld [smem:[#allocation19_spill]] }
  0x1a   : > { %p2632_p13 = pneg %p2616_p11 }
  0x1f   : > { %s2277_s23 = scalar_lea.hbm %s3058_s2, 256 }
  0x20   : > { %p2278_p12 = scmp.ne.s32.totalorder %s3058_s2, %s2277_s23  ;;  %p2284_p5 = scmp.lt.u32.totalorder %s2277_s23, %s3058_s2 }
  0x22   : > { %p2280_p0 = pnand %p2632_p13, %p2278_p12 }
  0x24   : > { %p2281_p3 = pneg %p2280_p0 }
  0x26   : > { %p2286_p7 = pnand %p2284_p5, %p2281_p3 }
  0x28   : > { %2289 = shalt.err (!%p2286_p7)
}
  0x29   : > { %s2290_s17 = scalar_lea.vmem %s2609_s15, 256  ;;  %p2298_p2 = scmp.lt.s32.totalorder %s2609_s15, %s2609_s15 }
  0x2a   : > { %p2291_p9 = scmp.ne.s32.totalorder %s2609_s15, %s2290_s17  ;;  %p2299_p6 = scmp.lt.s32.totalorder %s2290_s17, %s2290_s17 }
  0x2c   : > { %p2293_p10 = pnand %p2291_p9, %p2632_p13  ;;  %p2300_p12 = por %p2299_p6, %p2298_p2 }
  0x2e   : > { %p2294_p1 = pneg %p2293_p10 }
  0x30   : > { %p2301_p0 = pnand %p2300_p12, %p2294_p1 }
  0x32   : > { %2304 = shalt.err (!%p2301_p0)
}
  0x33   : > { %s2504_s19 = smov 128   ;;  %s2505_s21 = smov 8  }
  0x34   : > { %2187 = dma.hbm_to_vmem [thread:$0]  (!%p2616_p11), %s3058_s2, 256, %s2609_s15, [#allocation6], %s2504_s19, %s2504_s19, %s2505_s21  }
  0x35   : > { %s3060_s4 = sld [smem:[#allocation20_spill]] }
  0x3b   : > { %s2305_s10 = scalar_lea.hbm %s3060_s4, 384 }
  0x3c   : > { %p2306_p1 = scmp.ne.s32.totalorder %s3060_s4, %s2305_s10  ;;  %p2312_p10 = scmp.lt.u32.totalorder %s2305_s10, %s3060_s4 }
  0x3e   : > { %p2308_p2 = pnand %p2306_p1, %p2632_p13 }
  0x40   : > { %p2309_p6 = pneg %p2308_p2 }
  0x42   : > { %p2314_p3 = pnand %p2312_p10, %p2309_p6 }
  0x44   : > { %2317 = shalt.err (!%p2314_p3)
}
  0x45   : > { %s2318_s15 = scalar_lea.vmem %s2620_s18, 384  ;;  %p2326_p12 = scmp.lt.s32.totalorder %s2620_s18, %s2620_s18 }
  0x46   : > { %p2319_p5 = scmp.ne.s32.totalorder %s2620_s18, %s2318_s15  ;;  %p2327_p0 = scmp.lt.s32.totalorder %s2318_s15, %s2318_s15 }
  0x48   : > { %p2321_p7 = pnand %p2319_p5, %p2632_p13  ;;  %p2328_p1 = por %p2327_p0, %p2326_p12 }
  0x4a   : > { %p2322_p9 = pneg %p2321_p7 }
  0x4c   : > { %p2329_p2 = pnand %p2328_p1, %p2322_p9 }
  0x4e   : > { %2332 = shalt.err (!%p2329_p2)
}
  0x4f   : > { %2190 = dma.hbm_to_vmem [thread:$0]  (!%p2616_p11), %s3060_s4, 384, %s2620_s18, [#allocation9], %s2504_s19, %s2504_s19, %s2505_s21  }
  0x50   : > { %s3061_s6 = sld [smem:[#allocation21_spill]] }
  0x56   : > { %s2333_s24 = scalar_lea.hbm %s3061_s6, 384 }
  0x57   : > { %p2334_p6 = scmp.ne.s32.totalorder %s3061_s6, %s2333_s24  ;;  %p2340_p5 = scmp.lt.u32.totalorder %s2333_s24, %s3061_s6 }
  0x59   : > { %p2336_p10 = pnand %p2334_p6, %p2632_p13 }
  0x5b   : > { %p2337_p3 = pneg %p2336_p10 }
  0x5d   : > { %p2342_p7 = pnand %p2340_p5, %p2337_p3 }
  0x5f   : > { %2345 = shalt.err (!%p2342_p7)
}
  0x60   : > { %s2346_s15 = scalar_lea.vmem %s282_s20, 384  ;;  %p2354_p1 = scmp.lt.s32.totalorder %s282_s20, %s282_s20 }
  0x61   : > { %p2347_p9 = scmp.ne.s32.totalorder %s282_s20, %s2346_s15  ;;  %p2355_p2 = scmp.lt.s32.totalorder %s2346_s15, %s2346_s15 }
  0x63   : > { %p2349_p12 = pnand %p2347_p9, %p2632_p13  ;;  %p2356_p4 = por %p2355_p2, %p2354_p1 }
  0x65   : > { %p2350_p0 = pneg %p2349_p12 }
  0x67   : > { %p2357_p8 = pnand %p2356_p4, %p2350_p0 }
  0x69   : > { %2360 = shalt.err (!%p2357_p8)
}
  0x6a   : > { %2193 = dma.hbm_to_vmem [thread:$0]  (!%p2616_p11), %s3061_s6, 384, %s282_s20, [#allocation9], %s2504_s19, %s2504_s19, %s2505_s21  }
  0x6b   : > { %s2705_s26 = sadd.s32 1, %s2499_s30   ;;  %s35_s12 = sadd.s32 1, %s2495_s29 }
  0x6c   : > { %s32_s16 = ssub.s32 %s2499_s30, %s2705_s26  ;;  %p42_p8 = scmp.ne.s32.totalorder %s2495_s29, %s2491_s28 }
  0x6d   : > { %p33_p4 = scmp.eq.s32.totalorder %s32_s16, 0  ;;  %p43_p13 = scmp.eq.s32.totalorder %s2499_s30, 0 }
  0x6e   : > { %p2208_p6 = scmp.lt.s32.totalorder %s2499_s30, 2  ;;  %p3062_p3 = scmp.eq.s32.totalorder %s2586_s9, 1 }
  0x6f   : > { %s2715_s22 = scalar_select %p33_p4, %s2495_s29, %s35_s12  }
  0x70   : > { %p44_p10 = por %p43_p13, %p42_p8  ;;  %p2719_p5 = por %p3062_p3, %p42_p8 }
  0x71   : > { %s298_s24 = sand.u32 1, %s2495_s29   ;;  %s2025_s25 = sshll.u32 %s2499_s30, 7 }
  0x72   : > { %s3063_s23 = scalar_select %p2719_p5, 1, 0 }
  0x73   : > { %s2725_s20 = sshll.u32 %s298_s24, 3  ;;  %s2730_s10 = scalar_lea.hbm %s3034_s0, %s2025_s25 }
  0x74   : > { %s302_s14 = scalar_lea.vmem [#allocation2], %s2725_s20  ;;  %p2733_p11 = pnand %p2208_p6, %p44_p10 }
  0x75   : > { %s309_s17 = sshll.u32 %s302_s14, 4  ;;  %s2742_s16 = scalar_lea.hbm %s3035_s1, %s2025_s25  ;;  %s2737_s17 = int_to_ptr.vmem [resolvable:$true] %s309_s17 }
  0x76   : > { %s299_s12 = scalar_lea.sflag [#allocation3], %s298_s24  ;;  %s2361_s19 = scalar_lea.hbm %s2730_s10, 128 }
  0x77   : > { %p2362_p7 = scmp.ne.s32.totalorder %s2730_s10, %s2361_s19  ;;  %p2363_p9 = pneg %p2733_p11 }
  0x78   : > { %s2366_s2 = scalar_lea.hbm %s3034_s0, 256  ;;  %p2367_p1 = scmp.lt.u32.totalorder %s2730_s10, %s3034_s0 }
  0x79   : > { %p2364_p12 = pnand %p2363_p9, %p2362_p7  ;;  %p2368_p2 = scmp.lt.u32.totalorder %s2366_s2, %s2361_s19 }
  0x7a   : > { %p2370_p8 = scmp.lt.u32.totalorder %s2361_s19, %s2730_s10 }
  0x7b   : > { %p2365_p0 = pneg %p2364_p12  ;;  %p2369_p4 = por %p2368_p2, %p2367_p1 }
  0x7d   : > { %p2371_p13 = por %p2370_p8, %p2369_p4 }
  0x7f   : > { %p2372_p6 = pnand %p2371_p13, %p2365_p0 }
  0x81   : > { %2375 = shalt.err (!%p2372_p6)
}
  0x82   : > { %s2376_s24 = scalar_lea.vmem %s2737_s17, 128  ;;  %s2506_s25 = smov [#allocation2]  }
  0x83   : > { %p2377_p10 = scmp.ne.s32.totalorder %s2737_s17, %s2376_s24  ;;  %s2381_s18 = sshll.u32 %s2506_s25, 4  ;;  %s2382_s18 = int_to_ptr.vmem [resolvable:$false] %s2381_s18 }
  0x84   : > { %s2383_s4 = scalar_lea.vmem %s2382_s18, 256  ;;  %p2384_p12 = scmp.lt.s32.totalorder %s2737_s17, %s2382_s18 }
  0x85   : > { %p2379_p3 = pnand %p2377_p10, %p2363_p9  ;;  %p2385_p1 = scmp.lt.s32.totalorder %s2383_s4, %s2376_s24 }
  0x87   : > { %p2380_p7 = pneg %p2379_p3  ;;  %p2386_p2 = por %p2385_p1, %p2384_p12 }
  0x89   : > { %p2387_p4 = pnand %p2386_p2, %p2380_p7 }
  0x8b   : > { %2390 = shalt.err (!%p2387_p4)
}
  0x8c   : > { %2197 = dma.hbm_to_vmem [thread:$0]  (!%p2733_p11), %s2730_s10, 128, %s2737_s17, %s299_s12  }
  0x8d   : > { %s316_s2 = sand.u32 1, %s2499_s30   ;;  %s320_s6 = scalar_lea.vmem [#allocation5], %s2725_s20 }
  0x8e   : > { %s327_s27 = sshll.u32 %s320_s6, 4  ;;  %s317_s19 = scalar_lea.sflag [#allocation6], %s316_s2  ;;  %s328_s27 = int_to_ptr.vmem [resolvable:$true] %s327_s27 }
  0x8f   : > { %s2391_s21 = scalar_lea.hbm %s2742_s16, 128  ;;  %s2396_s25 = scalar_lea.hbm %s3035_s1, 256 }
  0x90   : > { %p2392_p0 = scmp.ne.s32.totalorder %s2742_s16, %s2391_s21  ;;  %p2397_p6 = scmp.lt.u32.totalorder %s2742_s16, %s3035_s1 }
  0x91   : > { %p2398_p10 = scmp.lt.u32.totalorder %s2396_s25, %s2391_s21  ;;  %p2400_p7 = scmp.lt.u32.totalorder %s2391_s21, %s2742_s16 }
  0x92   : > { %p2394_p8 = pnand %p2392_p0, %p2363_p9 }
  0x93   : > { %p2399_p3 = por %p2398_p10, %p2397_p6 }
  0x94   : > { %p2395_p13 = pneg %p2394_p8 }
  0x95   : > { %p2401_p12 = por %p2400_p7, %p2399_p3 }
  0x97   : > { %p2402_p1 = pnand %p2401_p12, %p2395_p13 }
  0x99   : > { %2405 = shalt.err (!%p2402_p1)
}
  0x9a   : > { %s2406_s20 = scalar_lea.vmem %s328_s27, 128  ;;  %s2507_s10 = smov [#allocation5]  }
  0x9b   : > { %p2407_p2 = scmp.ne.s32.totalorder %s328_s27, %s2406_s20  ;;  %s2411_s17 = sshll.u32 %s2507_s10, 4  ;;  %s2412_s17 = int_to_ptr.vmem [resolvable:$false] %s2411_s17 }
  0x9c   : > { %s2413_s12 = scalar_lea.vmem %s2412_s17, 256  ;;  %p2414_p8 = scmp.lt.s32.totalorder %s328_s27, %s2412_s17 }
  0x9d   : > { %p2409_p4 = pnand %p2407_p2, %p2363_p9  ;;  %p2415_p5 = scmp.lt.s32.totalorder %s2413_s12, %s2406_s20 }
  0x9f   : > { %p2410_p0 = pneg %p2409_p4  ;;  %p2416_p6 = por %p2415_p5, %p2414_p8 }
  0xa1   : > { %p2417_p10 = pnand %p2416_p6, %p2410_p0 }
  0xa3   : > { %2420 = shalt.err (!%p2417_p10)
}
  0xa4   : > { %2200 = dma.hbm_to_vmem [thread:$0]  (!%p2733_p11), %s2742_s16, 128, %s328_s27, %s317_s19  }
  0xa5   : > { %p3065_p13 = scmp.ne.s32.totalorder %s3056_s13, 0 }
  0xa6   : > { %s2793_s2 = sand.u32 (!%p3065_p13), 1, %s2491_s28   ;;  %p3066_p5 = scmp.ne.s32.totalorder (!%p3065_p13), %s3053_s11, 0 }
  0xa7   : > { %336 = sbr.rel (%p3065_p13) target bundleno = 1463 (0x5b7), region = 52  ;;  %s2796_s6 = sshll.u32 (!%p3065_p13), %s2793_s2, 3 }
  0xa8   : > { %s339_s21 = scalar_lea.sflag (!%p3065_p13), [#allocation3], %s2793_s2  ;;  %s342_s14 = scalar_lea.vmem (!%p3065_p13), [#allocation2], %s2796_s6 }
  0xae   : > { %2466 = dma.done.wait (%p3066_p5), %s339_s21, 128  }
  0xaf   : > { %2468 = vsyncadd (%p3066_p5), %s339_s21, 4294967168  ;;  %s347_s13 = sand.u32 1, %s2586_s9   ;;  %s351_s16 = scalar_lea.vmem [#allocation5], %s2796_s6 }
  0xb0   : > { %s348_s15 = scalar_lea.sflag [#allocation6], %s347_s13 }
  0xb1   : > { %2470 = dma.done.wait (%p3066_p5), %s348_s15, 128  }
  0xb2   : > { %2472 = vsyncadd (%p3066_p5), %s348_s15, 4294967168  ;;  %p3067_p11 = scmp.eq.s32.totalorder %s2586_s9, 0 }
  0xb4   : > { %2474 = dma.done.wait (%p3067_p11), [#allocation6], 256   ;;  %p3068_p9 = pmov %p3067_p11 }
  0xb6   : > { %2476 = vsyncadd (%p3068_p9), [#allocation6], 4294967040  ;;  %p3069_p3 = pmov %p3068_p9 }
  0xb8   : > { %2478 = dma.done.wait (%p3069_p3), [#allocation9], 768   ;;  %p3070_p7 = pmov %p3069_p3 }
  0xb9   : > { %v2508_v0 = vmov 0.0|0.0   ;;  %vm2509_vm0 = vmmov 0   ;;  %v2510_v1 = vmov 0.0   ;;  %v403_v2 = vld [vmem:[#allocation7] sm:$0xff]  ;;  %v404_v3 = vld [vmem:[#allocation7 + $0x8] sm:$0xff]  ;;  %v486_v4 = vld [vmem:[#allocation8] sm:$0xff]  ;;  %v665_v25 = vlaneseq }
  0xba   : > { %2480 = vsyncadd (%p3070_p7), [#allocation9], 4294966528  ;;  %2157 = vmatprep.subr.bf16.mxu0 %v2508_v0  ;;  %2160 = vmatprep.subr.bf16.mxu1 %v2508_v0  ;;  %v2158_v5 = vpack.c.bf16 %v404_v3, %v403_v2  ;;  %v487_v6 = vld [vmem:[#allocation8 + $0x8] sm:$0xff]  ;;  %v401_v8 = vld [vmem:[%s342_s14] sm:$0xff]  ;;  %vm412_vm1 = vcmask 130048   ;;  %vm496_vm2 = vcmask 195584  }
  0xbb   : > { %2096 = vmatprep.mubr.msk.f32.mxu0 %vm2509_vm0, %v2510_v1  ;;  %2105 = vmatprep.mubr.msk.f32.mxu1 %vm2509_vm0, %v2510_v1  ;;  %v2161_v7 = vpack.c.bf16 %v487_v6, %v486_v4  ;;  %v488_v9 = vld [vmem:[#allocation8 + $0x10] sm:$0xff]  ;;  %v402_v10 = vld [vmem:[%s351_s16] sm:$0xff]  ;;  %v570_v16 = vld [vmem:[#allocation10] sm:$0xff]  ;;  %s2511_s25 = smov 120   ;;  %s2512_s18 = smov 104   ;;  %v666_v30 = vshrl.u32 %v665_v25, 7 }
  0xbc   : > { %2159 = vmatpush3.bf16.msra.mxu0 %v2158_v5  ;;  %v2035_v11 = vld [vmem:[%s3037_s3] ss:$0 sm:$0xff]  ;;  %v571_v17 = vld [vmem:[#allocation10 + $0x8] sm:$0xff]  ;;  %v572_v22 = vld [vmem:[#allocation10 + $0x10] sm:$0xff]  ;;  %s2513_s4 = smov 112   ;;  %vm1088_vm3 = vcmask 64512  }
  0xbd   : > { %2162 = vmatpush3.bf16.msra.mxu1 %v2161_v7  ;;  %2163 = vmatprep.subr.bf16.mxu0 %v2508_v0  ;;  %v2037_v15 = vld [vmem:[%s3039_s5] ss:$0 sm:$0xff]  ;;  %v2164_v19 = vpack.c.bf16 %v571_v17, %v570_v16  ;;  %v2514_v23 = vmov 1983009808   ;;  %v2515_v27 = vmov 1934713408  }
  0xbe   : > { %2103 = vmatprep.subr.mxu1 %v2510_v1  ;;  %v663_v24 = vunpack.c.l.s4 %v2514_v23  ;;  %v695_v28 = vunpack.c.l.s4 %v2515_v27  ;;  %s2516_s17 = smov 16   ;;  %s2517_s12 = smov 8   ;;  %vm1880_vm4 = vcmask 261120  }
  0xbf   : > { %2097 = vmatmul.mubr.msk.f32.vlgmr.msra.gmra.mrb[0].mxu0 %vm412_vm1, %v401_v8  ;;  %s2518_s21 = smov 24   ;;  %s2062_s14 = sshll.u32 %s2586_s9, 7 }
  0xc0   : > { %2114 = vmatprep.mubr.msk.f32.mxu0 %vm2509_vm0, %v2510_v1  ;;  %2165 = vmatpush3.bf16.msra.mxu0 %v2164_v19  ;;  %v664_v29 = vunpack.c.0.s8 %v663_v24  ;;  %v696_v33 = vunpack.c.0.s8 %v695_v28  ;;  %s400_s13 = scalar_lea.vmem [#allocation11], %s2796_s6  ;;  %s2990_s27 = scalar_lea.hbm %s3042_s8, %s2062_s14 }
  0xc1   : > { %2104 = vmatpush3.msra.mxu1 %v488_v9  ;;  %2112 = vmatprep.subr.mxu0 %v2510_v1  ;;  %s1897_s15 = sshll.u32 %s400_s13, 4  ;;  %s1884_s9 = scalar_lea.sflag [#allocation4], %s2793_s2  ;;  %s2992_s15 = int_to_ptr.vmem [resolvable:$true] %s1897_s15 }
  0xc2   : > { %2106 = vmatmul.mubr.msk.f32.vlgmr.msra.gmra.mrb[0].mxu1 %vm496_vm2, %v402_v10  ;;  %2117 = vmatprep.subr.mxu1 %v2510_v1  ;;  %v2852_v34 = vsub.s32 %v664_v29, %v666_v30  ;;  %v2854_v41 = vsub.s32 %v696_v33, %v666_v30  ;;  %s2421_s6 = scalar_lea.vmem %s2992_s15, 128  ;;  %p3071_p1 = scmp.ne.s32.totalorder %s3063_s23, 0 }
  0xc3   : > { %2119 = vmatprep.mubr.msk.f32.mxu1 %vm2509_vm0, %v2510_v1  ;;  %p2422_p12 = scmp.ne.s32.totalorder %s2992_s15, %s2421_s6  ;;  %s2519_s19 = smov [#allocation11]  }
  0xc4   : > { %2113 = vmatpush3.msra.mxu0 %v572_v22  ;;  %s2425_s24 = sshll.u32 %s2519_s19, 4  ;;  %s2426_s24 = int_to_ptr.vmem [resolvable:$false] %s2425_s24 }
  0xc5   : > { %2122 = vmatprep.subr.mxu0 %v2510_v1  ;;  %2115 = vmatmul.mubr.msk.f32.vlgmr.msra.gmra.mrb[2].mxu0 %vm496_vm2, %v402_v10  ;;  %p2423_p2 = pnand %p2422_p12, %p3071_p1  ;;  %p2428_p0 = scmp.lt.s32.totalorder %s2992_s15, %s2426_s24 }
  0xc6   : > { %2124 = vmatprep.mubr.msk.f32.mxu0 %vm2509_vm0, %v2510_v1 }
  0xc7   : > { %p2424_p4 = pneg %p2423_p2 }
 0x192   : > { %v482_v12 = vpop.f32.mrb[0].mxu0 }
 0x193   : > { %v2833_v13 = vadd.f32 %v2035_v11, %v482_v12  ;;  %v2098_v14 = vpop.f32.mrb[1].mxu0 }
 0x195   : > { %v566_v18 = vpop.f32.mrb[0].mxu1  ;;  %651 = vrot.lane.b32.xlu1 %v2833_v13, %s2511_s25 }
 0x196   : > { %v567_v20 = vadd.f32 %v2037_v15, %v566_v18  ;;  %v2107_v21 = vpop.f32.mrb[1].mxu1 }
 0x198   : > { %797 = vrot.lane.b32.xlu0 %v567_v20, %s2511_s25 }
 0x199   : > { %803 = vrot.lane.b32.xlu1 %v567_v20, %s2512_s18 }
 0x19c   : > { %800 = vrot.lane.b32.xlu0 %v567_v20, %s2513_s4 }
 0x19d   : > { %657 = vrot.lane.b32.xlu1 %v2833_v13, %s2512_s18 }
 0x1a0   : > { %654 = vrot.lane.b32.xlu0 %v2833_v13, %s2513_s4 }
 0x207   : > { %v652_v26 = vpop.permute.xlu1 %651 }
 0x20a   : > { %v798_v31 = vpop.permute.xlu0 %797 }
 0x20b   : > { %v804_v32 = vpop.permute.xlu1 %803 }
 0x20c   : > { %v822_v35 = vcombine.low %v798_v31, %v804_v32  ;;  %v823_v36 = vcombine.high %v798_v31, %v804_v32 }
 0x20e   : > { %v801_v37 = vpop.permute.xlu0 %800  ;;  %v830_v42 = vrot.slane %v822_v35, %v2852_v34  ;;  %v837_v43 = vrot.slane %v823_v36, %v2852_v34 }
 0x20f   : > { %v806_v38 = vcombine.low %v567_v20, %v801_v37  ;;  %v807_v39 = vcombine.high %v567_v20, %v801_v37  ;;  %v658_v40 = vpop.permute.xlu1 %657 }
 0x210   : > { %v676_v46 = vcombine.low %v652_v26, %v658_v40  ;;  %v677_v47 = vcombine.high %v652_v26, %v658_v40 }
 0x211   : > { %v814_v44 = vrot.slane %v806_v38, %v2852_v34  ;;  %v821_v45 = vrot.slane %v807_v39, %v2852_v34 }
 0x212   : > { %v655_v48 = vpop.permute.xlu0 %654  ;;  %v684_v59 = vrot.slane %v676_v46, %v2852_v34  ;;  %v691_v60 = vrot.slane %v677_v47, %v2852_v34 }
 0x213   : > { %v838_v49 = vcombine.low %v814_v44, %v830_v42  ;;  %v839_v50 = vcombine.high %v814_v44, %v830_v42  ;;  %v854_v51 = vcombine.low %v821_v45, %v837_v43  ;;  %v855_v52 = vcombine.high %v821_v45, %v837_v43 }
 0x214   : > { %v660_v53 = vcombine.low %v2833_v13, %v655_v48  ;;  %v661_v54 = vcombine.high %v2833_v13, %v655_v48 }
 0x215   : > { %v846_v55 = vrot.slane %v838_v49, %v2854_v41  ;;  %v853_v56 = vrot.slane %v839_v50, %v2854_v41  ;;  %v862_v57 = vrot.slane %v854_v51, %v2854_v41  ;;  %v869_v58 = vrot.slane %v855_v52, %v2854_v41  ;;  %v646_v50 = vpop.f32.mrb[2].mxu0 }
 0x216   : > { %v668_v61 = vrot.slane %v660_v53, %v2852_v34  ;;  %v675_v62 = vrot.slane %v661_v54, %v2852_v34  ;;  %v2116_v51 = vpop.f32.mrb[3].mxu0 }
 0x217   : > { %v874_v63 = vcombine.low %v846_v55, %v853_v56  ;;  %v2043_v0 = vcombine.high %v846_v55, %v853_v56  ;;  %v890_v2 = vcombine.low %v862_v57, %v869_v58  ;;  %v2044_v3 = vcombine.high %v862_v57, %v869_v58 }
 0x218   : > { %v692_v4 = vcombine.low %v668_v61, %v684_v59  ;;  %v693_v5 = vcombine.high %v668_v61, %v684_v59  ;;  %v708_v6 = vcombine.low %v675_v62, %v691_v60  ;;  %v709_v7 = vcombine.high %v675_v62, %v691_v60 }
 0x219   : > { %v881_v8 = vrot.slane %v874_v63, %v2852_v34  ;;  %v889_v9 = vrot.slane %v2043_v0, %v2852_v34  ;;  %v897_v10 = vrot.slane %v890_v2, %v2852_v34  ;;  %v905_v11 = vrot.slane %v2044_v3, %v2852_v34  ;;  %v2039_v0 = vld [vmem:[%s3041_s7] ss:$0 sm:$0xff] }
 0x21a   : > { %v700_v12 = vrot.slane %v692_v4, %v2854_v41  ;;  %v707_v13 = vrot.slane %v693_v5, %v2854_v41  ;;  %v716_v14 = vrot.slane %v708_v6, %v2854_v41  ;;  %v723_v15 = vrot.slane %v709_v7, %v2854_v41 }
 0x21b   : > { %v906_v16 = vcombine.low %v881_v8, %v889_v9  ;;  %v922_v17 = vcombine.low %v897_v10, %v905_v11  ;;  %v907_v22 = vcombine.high %v881_v8, %v889_v9  ;;  %v923_v23 = vcombine.high %v897_v10, %v905_v11 }
 0x21c   : > { %v728_v18 = vcombine.low %v700_v12, %v707_v13  ;;  %v2041_v19 = vcombine.high %v700_v12, %v707_v13  ;;  %v744_v20 = vcombine.low %v716_v14, %v723_v15  ;;  %v2042_v21 = vcombine.high %v716_v14, %v723_v15 }
 0x21d   : > { %v914_v24 = vrot.slane %v906_v16, %v2854_v41  ;;  %v930_v25 = vrot.slane %v922_v17, %v2854_v41  ;;  %v921_v37 = vrot.slane %v907_v22, %v2854_v41  ;;  %v937_v38 = vrot.slane %v923_v23, %v2854_v41 }
 0x21e   : > { %v735_v26 = vrot.slane %v728_v18, %v2852_v34  ;;  %v743_v27 = vrot.slane %v2041_v19, %v2852_v34  ;;  %v751_v28 = vrot.slane %v744_v20, %v2852_v34  ;;  %v759_v29 = vrot.slane %v2042_v21, %v2852_v34 }
 0x21f   : > { %v938_v30 = vcombine.low %v914_v24, %v930_v25  ;;  %v939_v31 = vcombine.high %v914_v24, %v930_v25  ;;  %v940_v46 = vcombine.low %v921_v37, %v937_v38  ;;  %v941_v47 = vcombine.high %v921_v37, %v937_v38 }
 0x220   : > { %v760_v32 = vcombine.low %v735_v26, %v743_v27  ;;  %v761_v33 = vcombine.high %v735_v26, %v743_v27  ;;  %v776_v35 = vcombine.low %v751_v28, %v759_v29  ;;  %v777_v36 = vcombine.high %v751_v28, %v759_v29 }
 0x221   : > { %2118 = vmatpush3.xpose.msk.msra.mxu1 %vm1088_vm3, %v938_v30  ;;  %2123 = vmatpush3.xpose.msk.msra.mxu0 %vm1088_vm3, %v939_v31  ;;  %v647_v2 = vadd.f32 %v2039_v0, %v646_v50 }
 0x222   : > { %2127 = vmatprep.subr.mxu1 %v2510_v1  ;;  %2132 = vmatprep.subr.mxu0 %v2510_v1  ;;  %v768_v39 = vrot.slane %v760_v32, %v2854_v41  ;;  %v784_v40 = vrot.slane %v776_v35, %v2854_v41  ;;  %v775_v44 = vrot.slane %v761_v33, %v2854_v41 }
 0x223   : > { %v791_v45 = vrot.slane %v777_v36, %v2854_v41 }
 0x224   : > { %v792_v42 = vcombine.low %v768_v39, %v784_v40  ;;  %v793_v43 = vcombine.high %v768_v39, %v784_v40 }
 0x225   : > { %v794_v48 = vcombine.low %v775_v44, %v791_v45  ;;  %v795_v49 = vcombine.high %v775_v44, %v791_v45 }
 0x226   : > { %2120 = vmatmul.mubr.msk.f32.vlgmr.msra.gmra.mrb[2].mxu1 %vm1088_vm3, %v792_v42  ;;  %2125 = vmatmul.mubr.msk.f32.vlgmr.msra.gmra.mrb[4].mxu0 %vm1088_vm3, %v793_v43 }
 0x227   : > { %2128 = vmatpush3.xpose.msk.msra.mxu1 %vm1088_vm3, %v940_v46  ;;  %2133 = vmatpush3.xpose.msk.msra.mxu0 %vm1088_vm3, %v941_v47 }
 0x228   : > { %2129 = vmatprep.mubr.msk.f32.mxu1 %vm2509_vm0, %v2510_v1  ;;  %2134 = vmatprep.mubr.msk.f32.mxu0 %vm2509_vm0, %v2510_v1 }
 0x229   : > { %2137 = vmatprep.subr.mxu1 %v2510_v1  ;;  %2142 = vmatprep.subr.mxu0 %v2510_v1 }
 0x22a   : > { %2130 = vmatmul.mubr.msk.f32.vlgmr.msra.gmra.mrb[4].mxu1 %vm1088_vm3, %v794_v48  ;;  %2135 = vmatmul.mubr.msk.f32.vlgmr.msra.gmra.mrb[6].mxu0 %vm1088_vm3, %v795_v49 }
 0x22b   : > { %2139 = vmatprep.mubr.msk.f32.mxu1 %vm2509_vm0, %v2510_v1  ;;  %2144 = vmatprep.mubr.msk.f32.mxu0 %vm2509_vm0, %v2510_v1 }
 0x2f9   : > { %v1161_v52 = vpop.f32.mrb[2].mxu1  ;;  %v1237_v53 = vpop.f32.mrb[4].mxu0 }
 0x2fa   : > { %v2121_v54 = vpop.f32.mrb[3].mxu1  ;;  %v2126_v55 = vpop.f32.mrb[5].mxu0  ;;  %v1393_v56 = vsel %vm1088_vm3, %v1161_v52, -inf  ;;  %v1396_v57 = vsel %vm1088_vm3, %v1237_v53, -inf }
 0x2fb   : > { %1394 = vmax.xlane.f32.xlu0 %v1393_v56  ;;  %1397 = vmax.xlane.f32.xlu1 %v1396_v57 }
 0x2fd   : > { %v1313_v58 = vpop.f32.mrb[4].mxu1  ;;  %v1389_v59 = vpop.f32.mrb[6].mxu0 }
 0x2fe   : > { %v2131_v60 = vpop.f32.mrb[5].mxu1  ;;  %v2136_v61 = vpop.f32.mrb[7].mxu0  ;;  %v1399_v62 = vsel %vm1088_vm3, %v1313_v58, -inf  ;;  %v1402_v63 = vsel %vm1088_vm3, %v1389_v59, -inf }
 0x2ff   : > { %1400 = vmax.xlane.f32.xlu0 %v1399_v62 }
 0x303   : > { %1403 = vmax.xlane.f32.xlu0 %v1402_v63 }
 0x30c   : > { %943 = vrot.lane.b32.xlu1 %v647_v2, %s2511_s25  ;;  %s2427_s25 = scalar_lea.vmem %s2426_s24, 256 }
 0x30d   : > { %p2429_p8 = scmp.lt.s32.totalorder %s2427_s25, %s2421_s6 }
 0x30f   : > { %p2430_p6 = por %p2429_p8, %p2428_p0 }
 0x311   : > { %p2431_p10 = pnand %p2430_p6, %p2424_p4 }
 0x388   : > { %v1395_v3 = vpop.xlane.xlu0 %1394  ;;  %v1398_v4 = vpop.xlane.xlu1 %1397 }
 0x389   : > { %v1405_v5 = vsub.f32 %v1161_v52, %v1395_v3  ;;  %v1406_v6 = vsub.f32 %v1237_v53, %v1398_v4 }
 0x38b   : > { %v1409_v7 = vmul.f32 1.442695, %v1405_v5  ;;  %v1411_v8 = vmul.f32 1.442695, %v1406_v6 }
 0x38c   : > { %v1401_v9 = vpop.xlane.xlu0 %1400  ;;  %v944_v23 = vpop.permute.xlu1 %943 }
 0x38d   : > { %2261 = vpow2.f32 %v1409_v7  ;;  %v1407_v10 = vsub.f32 %v1313_v58, %v1401_v9 }
 0x38e   : > { %2263 = vpow2.f32 %v1411_v8 }
 0x38f   : > { %v1413_v11 = vmul.f32 1.442695, %v1407_v10 }
 0x390   : > { %v1404_v12 = vpop.xlane.xlu0 %1403 }
 0x391   : > { %2265 = vpow2.f32 %v1413_v11  ;;  %v1408_v13 = vsub.f32 %v1389_v59, %v1404_v12 }
 0x393   : > { %v1415_v14 = vmul.f32 1.442695, %v1408_v13 }
 0x395   : > { %2267 = vpow2.f32 %v1415_v14 }
 0x397   : > { %v2918_v15 = vpop.eup %2261 }
 0x398   : > { %v2920_v16 = vpop.eup %2263  ;;  %v1417_v17 = vsel %vm1088_vm3, %v2918_v15, 0.0 }
 0x399   : > { %1418 = vadd.xlane.f32.xlu1 %v1417_v17  ;;  %v1420_v18 = vsel %vm1088_vm3, %v2920_v16, 0.0 }
 0x39a   : > { %1421 = vadd.xlane.f32.xlu0 %v1420_v18 }
 0x39b   : > { %v2926_v19 = vpop.eup %2265 }
 0x39c   : > { %v1423_v20 = vsel %vm1088_vm3, %v2926_v19, 0.0 }
 0x39d   : > { %1424 = vadd.xlane.f32.xlu1 %v1423_v20 }
 0x39f   : > { %v2930_v21 = vpop.eup %2267 }
 0x3a0   : > { %v1426_v22 = vsel %vm1088_vm3, %v2930_v21, 0.0 }
 0x3a1   : > { %1427 = vadd.xlane.f32.xlu0 %v1426_v22 }
 0x3ae   : > { %949 = vrot.lane.b32.xlu1 %v647_v2, %s2512_s18 }
 0x3b7   : > { %946 = vrot.lane.b32.xlu0 %v647_v2, %s2513_s4 }
 0x426   : > { %v1419_v24 = vpop.xlane.xlu1 %1418 }
 0x427   : > { %v1422_v25 = vpop.xlane.xlu0 %1421  ;;  %2269 = vrcp.f32 %v1419_v24 }
 0x428   : > { %2271 = vrcp.f32 %v1422_v25 }
 0x42a   : > { %v1425_v26 = vpop.xlane.xlu1 %1424 }
 0x42b   : > { %2273 = vrcp.f32 %v1425_v26 }
 0x42e   : > { %v950_v27 = vpop.permute.xlu1 %949  ;;  %v1428_v28 = vpop.xlane.xlu0 %1427 }
 0x42f   : > { %v968_v29 = vcombine.low %v944_v23, %v950_v27  ;;  %v969_v30 = vcombine.high %v944_v23, %v950_v27  ;;  %2275 = vrcp.f32 %v1428_v28 }
 0x431   : > { %v976_v35 = vrot.slane %v968_v29, %v2852_v34  ;;  %v983_v36 = vrot.slane %v969_v30, %v2852_v34  ;;  %v2270_v56 = vpop.eup %2269 }
 0x432   : > { %v947_v31 = vpop.permute.xlu0 %946  ;;  %v2272_v61 = vpop.eup %2271  ;;  %v1430_v7 = vmul.f32 %v2270_v56, %v2918_v15 }
 0x433   : > { %v952_v32 = vcombine.low %v647_v2, %v947_v31  ;;  %v953_v33 = vcombine.high %v647_v2, %v947_v31  ;;  %v1432_v8 = vmul.f32 %v2272_v61, %v2920_v16 }
 0x435   : > { %v960_v37 = vrot.slane %v952_v32, %v2852_v34  ;;  %v967_v38 = vrot.slane %v953_v33, %v2852_v34  ;;  %v2274_v0 = vpop.eup %2273 }
 0x436   : > { %v1434_v11 = vmul.f32 %v2274_v0, %v2926_v19 }
 0x437   : > { %v984_v39 = vcombine.low %v960_v37, %v976_v35  ;;  %v985_v40 = vcombine.high %v960_v37, %v976_v35  ;;  %v1000_v42 = vcombine.low %v967_v38, %v983_v36  ;;  %v1001_v43 = vcombine.high %v967_v38, %v983_v36 }
 0x439   : > { %v992_v44 = vrot.slane %v984_v39, %v2854_v41  ;;  %v999_v45 = vrot.slane %v985_v40, %v2854_v41  ;;  %v1008_v46 = vrot.slane %v1000_v42, %v2854_v41  ;;  %v1015_v47 = vrot.slane %v1001_v43, %v2854_v41  ;;  %v2276_v6 = vpop.eup %2275 }
 0x43a   : > { %v1436_v12 = vmul.f32 %v2276_v6, %v2930_v21 }
 0x43b   : > { %v1020_v48 = vcombine.low %v992_v44, %v999_v45  ;;  %v2045_v49 = vcombine.high %v992_v44, %v999_v45  ;;  %v1036_v50 = vcombine.low %v1008_v46, %v1015_v47  ;;  %v2046_v51 = vcombine.high %v1008_v46, %v1015_v47 }
 0x43d   : > { %v1027_v52 = vrot.slane %v1020_v48, %v2852_v34  ;;  %v1035_v53 = vrot.slane %v2045_v49, %v2852_v34  ;;  %v1043_v54 = vrot.slane %v1036_v50, %v2852_v34  ;;  %v1051_v55 = vrot.slane %v2046_v51, %v2852_v34 }
 0x43f   : > { %v1052_v57 = vcombine.low %v1027_v52, %v1035_v53  ;;  %v1068_v58 = vcombine.low %v1043_v54, %v1051_v55  ;;  %v1053_v59 = vcombine.high %v1027_v52, %v1035_v53  ;;  %v1069_v60 = vcombine.high %v1043_v54, %v1051_v55 }
 0x441   : > { %v1060_v62 = vrot.slane %v1052_v57, %v2854_v41  ;;  %v1076_v63 = vrot.slane %v1068_v58, %v2854_v41  ;;  %v1067_v2 = vrot.slane %v1053_v59, %v2854_v41  ;;  %v1083_v3 = vrot.slane %v1069_v60, %v2854_v41 }
 0x443   : > { %v1084_v4 = vcombine.low %v1060_v62, %v1076_v63  ;;  %v1085_v5 = vcombine.high %v1060_v62, %v1076_v63  ;;  %v1086_v9 = vcombine.low %v1067_v2, %v1083_v3  ;;  %v1087_v10 = vcombine.high %v1067_v2, %v1083_v3 }
 0x445   : > { %2138 = vmatpush3.msra.mxu1 %v1084_v4  ;;  %2143 = vmatpush3.msra.mxu0 %v1085_v5 }
 0x446   : > { %2140 = vmatmul.mubr.msk.f32.vlgmr.msra.gmra.mrb[6].mxu1 %vm1088_vm3, %v1430_v7  ;;  %2145 = vmatmul.mubr.msk.f32.vlgmr.msra.gmra.mrb[8].mxu0 %vm1088_vm3, %v1432_v8 }
 0x447   : > { %2147 = vmatprep.subr.mxu1 %v2510_v1  ;;  %2152 = vmatprep.subr.mxu0 %v2510_v1 }
 0x448   : > { %2148 = vmatpush3.msra.mxu1 %v1086_v9  ;;  %2153 = vmatpush3.msra.mxu0 %v1087_v10 }
 0x449   : > { %2149 = vmatprep.mubr.msk.f32.mxu1 %vm2509_vm0, %v2510_v1  ;;  %2154 = vmatprep.mubr.msk.f32.mxu0 %vm2509_vm0, %v2510_v1 }
 0x44a   : > { %2150 = vmatmul.mubr.msk.f32.vlgmr.msra.gmra.mrb[8].mxu1 %vm1088_vm3, %v1434_v11  ;;  %2155 = vmatmul.mubr.msk.f32.vlgmr.msra.gmra.mrb[10].mxu0 %vm1088_vm3, %v1436_v12 }
 0x519   : > { %v1506_v13 = vpop.f32.mrb[6].mxu1  ;;  %v1579_v14 = vpop.f32.mrb[8].mxu0 }
 0x51a   : > { %v2141_v15 = vpop.f32.mrb[7].mxu1  ;;  %v2146_v16 = vpop.f32.mrb[9].mxu0 }
 0x51d   : > { %v1652_v17 = vpop.f32.mrb[8].mxu1  ;;  %v1725_v18 = vpop.f32.mrb[10].mxu0 }
 0x51e   : > { %v1729_v19 = vcombine.low %v1506_v13, %v1652_v17  ;;  %v1730_v20 = vcombine.high %v1506_v13, %v1652_v17  ;;  %v1745_v21 = vcombine.low %v1579_v14, %v1725_v18  ;;  %v1746_v22 = vcombine.high %v1579_v14, %v1725_v18  ;;  %v2151_v23 = vpop.f32.mrb[9].mxu1  ;;  %v2156_v24 = vpop.f32.mrb[11].mxu0 }
 0x520   : > { %v1737_v25 = vrot.slane %v1729_v19, %v2852_v34  ;;  %v1744_v1 = vrot.slane %v1730_v20, %v2852_v34  ;;  %v1753_v26 = vrot.slane %v1745_v21, %v2852_v34  ;;  %v1760_v27 = vrot.slane %v1746_v22, %v2852_v34 }
 0x522   : > { %v1761_v28 = vcombine.low %v1737_v25, %v1753_v26  ;;  %v1762_v29 = vcombine.high %v1737_v25, %v1753_v26  ;;  %v1777_v30 = vcombine.low %v1744_v1, %v1760_v27  ;;  %v1778_v31 = vcombine.high %v1744_v1, %v1760_v27 }
 0x524   : > { %v1769_v32 = vrot.slane %v1761_v28, %v2854_v41  ;;  %v1776_v33 = vrot.slane %v1762_v29, %v2854_v41  ;;  %v1785_v35 = vrot.slane %v1777_v30, %v2854_v41  ;;  %v1792_v36 = vrot.slane %v1778_v31, %v2854_v41 }
 0x526   : > { %v1797_v37 = vcombine.low %v1769_v32, %v1776_v33  ;;  %v2059_v38 = vcombine.high %v1769_v32, %v1776_v33  ;;  %v1813_v39 = vcombine.low %v1785_v35, %v1792_v36  ;;  %v2060_v40 = vcombine.high %v1785_v35, %v1792_v36 }
 0x528   : > { %v1804_v42 = vrot.slane %v1797_v37, %v2852_v34  ;;  %v1812_v43 = vrot.slane %v2059_v38, %v2852_v34  ;;  %v1820_v44 = vrot.slane %v1813_v39, %v2852_v34  ;;  %v1828_v45 = vrot.slane %v2060_v40, %v2852_v34 }
 0x52a   : > { %v1830_v46 = vcombine.high %v1804_v42, %v1812_v43  ;;  %v1846_v47 = vcombine.high %v1820_v44, %v1828_v45  ;;  %v1829_v48 = vcombine.low %v1804_v42, %v1812_v43  ;;  %v1845_v49 = vcombine.low %v1820_v44, %v1828_v45 }
 0x52c   : > { %v1844_v50 = vrot.slane %v1830_v46, %v2854_v41  ;;  %v1860_v51 = vrot.slane %v1846_v47, %v2854_v41  ;;  %v1837_v52 = vrot.slane %v1829_v48, %v2854_v41  ;;  %v1853_v53 = vrot.slane %v1845_v49, %v2854_v41 }
 0x52e   : > { %v1863_v54 = vcombine.low %v1844_v50, %v1860_v51  ;;  %v1862_v55 = vcombine.high %v1837_v52, %v1853_v53  ;;  %v1864_v56 = vcombine.high %v1844_v50, %v1860_v51  ;;  %v1861_v57 = vcombine.low %v1837_v52, %v1853_v53 }
 0x530   : > { %1870 = vrot.lane.b32.xlu0 %v1863_v54, %s2516_s17  ;;  %1866 = vrot.lane.b32.xlu1 %v1862_v55, %s2517_s12 }
 0x534   : > { %1874 = vrot.lane.b32.xlu1 %v1864_v56, %s2518_s21 }
 0x5a2   : > { %v1867_v34 = vpop.permute.xlu1 %1866  ;;  %v1871_v58 = vpop.permute.xlu0 %1870 }
 0x5a3   : > { %v1877_v59 = vsel %vm1088_vm3, %v1861_v57, %v1867_v34 }
 0x5a4   : > { %v1878_v60 = vsel %vm412_vm1, %v1877_v59, %v1871_v58 }
 0x5a6   : > { %v1875_v41 = vpop.permute.xlu1 %1874 }
 0x5a7   : > { %v1879_v61 = vsel %vm496_vm2, %v1878_v60, %v1875_v41 }
 0x5a8   : > { %v1881_v62 = vsel %vm1880_vm4, %v1879_v61, 0.0 }
 0x5a9   : > { %1882 = vst [vmem:[%s400_s13] sm:$0xff] %v1881_v62 }
 0x5aa   : > { %2434 = shalt.err (!%p2431_p10)
}
 0x5ab   : > { %s2435_s2 = scalar_lea.hbm %s2990_s27, 128  ;;  %s2439_s20 = scalar_lea.hbm %s3042_s8, 256 }
 0x5ac   : > { %p2436_p13 = scmp.ne.s32.totalorder %s2990_s27, %s2435_s2  ;;  %p2440_p9 = scmp.lt.u32.totalorder %s2990_s27, %s3042_s8 }
 0x5ad   : > { %p2441_p3 = scmp.lt.u32.totalorder %s2439_s20, %s2435_s2  ;;  %p2443_p12 = scmp.lt.u32.totalorder %s2435_s2, %s2990_s27 }
 0x5ae   : > { %p2437_p5 = pnand %p2436_p13, %p3071_p1 }
 0x5af   : > { %p2442_p7 = por %p2441_p3, %p2440_p9 }
 0x5b0   : > { %p2438_p11 = pneg %p2437_p5 }
 0x5b1   : > { %p2444_p2 = por %p2443_p12, %p2442_p7 }
 0x5b3   : > { %p2445_p4 = pnand %p2444_p2, %p2438_p11 }
 0x5b5   : > { %2448 = shalt.err (!%p2445_p4)
}
 0x5b6   : > { %2182 = dma.vmem_to_hbm [thread:$0]  (%p3071_p1), %s2992_s15, 128, %s2990_s27, %s1884_s9  }
 0x5b7 PF: > { %s3072_s12 = sld [smem:[#allocation17_spill]]  ;;  %s3073_s21 = sld [smem:[#allocation18_spill]] }
 0x5b8   : > { %p3075_p8 = scmp.ge.s32.totalorder %s2499_s30, 2 }
 0x5bd   : > { %s1909_s14 = sand.u32 1, %s3072_s12   ;;  %p3074_p0 = scmp.ne.s32.totalorder %s3073_s21, 0 }
 0x5be   : > { %s1910_s13 = scalar_lea.sflag [#allocation4], %s1909_s14 }
 0x5bf   : > { %p2202_p6 = pnand %p3075_p8, %p3074_p0 }
 0x5c1   : > { %2482 = dma.done.wait (!%p2202_p6), %s1910_s13, 128  }
 0x5c2   : > { %2484 = vsyncadd (!%p2202_p6), %s1910_s13, 4294967168  ;;  %p25_p10 = scmp.ge.s32.totalorder %s2705_s26, 4   ;;  %s3076_s27 = smov %s2491_s28 }
 0x5c3   : > { %s3077_s28 = smov %s2495_s29  ;;  %s3078_s29 = smov %s2715_s22 }
 0x5c4   : > { %s3079_s30 = smov %s2705_s26  ;;  %27 = sbr.rel (!%p25_p10) target bundleno = 12 (0xc), region = 122 }
 0x5cb   :  { %1915 = vsyncpa [#allocation3], 1 }
 0x5cc   :  { %1917 = vsyncpa [#allocation3 + $0x1], 1 }
 0x5cd   :  { %1918 = vsyncpa [#allocation6], 1 }
 0x5ce   :  { %1920 = vsyncpa [#allocation6 + $0x1], 1 }
 0x5cf   :  { %1921 = vsyncpa [#allocation9], 1 }
 0x5d0   :  { %1922 = vsyncpa [#allocation4], 1 }
 0x5d1   :  { %1924 = vsyncpa [#allocation4 + $0x1], 1 }

</bundles_post_ra>
